<compile_context>
chip_gen: v7x
topology: tpu7x:2x2x1
jax: 0.10.0
libtpu: 0.0.40
codegen_flags: <defaults>
</compile_context>

<pallas_src>
import jax
import jax.numpy as jnp
import numpy as np
from jax import lax
from jax.experimental import pallas as pl
from jax.experimental.pallas import tpu as pltpu


def _celnr_kernel(iota_ref, logits_ref, tgt_ref, out_ref):
    """One tile of rows: per-row cross-entropy loss (lse - picked_logit)."""
    logits = logits_ref[...]                                   # (tm, C) native dtype
    tgt = tgt_ref[...]                                         # (tm, 1) int32
    col = iota_ref[...]                                        # (1,  C) int32 (resident)

    # Gather logits[row, target[row]] via one-hot: compare + mul + lane reduce.
    # Exact even in bf16 (at most one nonzero per row).
    onehot = (col == tgt).astype(logits.dtype)                 # (tm, C)
    picked = jnp.sum(onehot * logits, axis=-1,
                     keepdims=True).astype(jnp.float32)        # (tm, 1) f32

    # Numerically-stable log-sum-exp over the class (lane) axis.
    # max / subtract in native dtype; exp/log/accumulate in f32 (EUP slot).
    m = jnp.max(logits, axis=-1, keepdims=True)                # (tm, 1)
    p = jnp.exp((logits - m).astype(jnp.float32))              # (tm, C) f32
    lse = m.astype(jnp.float32) + jnp.log(
        jnp.sum(p, axis=-1, keepdims=True))                    # (tm, 1) f32

    out_ref[...] = lse - picked                                # (tm, 1) f32


def _vmem_capacity_bytes():
    """Physical per-core VMEM (128 MiB v5e/v6e, 64 MiB v7x); safe fallback."""
    try:
        return int(pltpu.get_tpu_info().vmem_capacity_bytes)
    except Exception:
        return 64 * 1024 * 1024  # conservative: v7x per-TC VMEM


def _pick_tile_rows(n, c, itemsize, budget_bytes):
    """Largest sublane-aligned row tile whose f32 working copy fits the budget.

    Also keeps the grid at >= 2 steps when N allows, so the 'parallel' row
    axis has work for both TensorCores on v7x.
    """
    sublane = {4: 8, 2: 16, 1: 32}.get(itemsize, 8)
    rows_needed = pl.cdiv(n, sublane) * sublane
    budget_rows = max(sublane, budget_bytes // (c * 4))
    tile = min(budget_rows, rows_needed)
    if tile >= rows_needed and rows_needed >= 2 * sublane:
        tile = pl.cdiv(rows_needed // 2, sublane) * sublane
    return max(sublane, (tile // sublane) * sublane)


def celnr_loss(logits, target, label_smoothing, key, *, tile_rows=None):
    """CELNR forward. logits: (N, C) float (f32/bf16), target: (N,) int."""
    N, C = logits.shape
    itemsize = jnp.dtype(logits.dtype).itemsize

    # --- label-noise corruption (cheap glue, deterministic PRNG) ------------
    k_rand, k_mask = jax.random.split(key)
    target = target.astype(jnp.int32)
    random_target = jax.random.randint(k_rand, target.shape, 0, C,
                                       dtype=jnp.int32)
    mask = (jax.random.uniform(k_mask, target.shape, dtype=jnp.float32)
            < label_smoothing).astype(jnp.int32)
    noisy_target = target * (1 - mask) + random_target * mask

    # --- per-generation VMEM budgeting --------------------------------------
    vmem_cap = _vmem_capacity_bytes()
    block_budget = max(1 << 20, vmem_cap // 16)          # ~8 MiB v6e, ~4 MiB v7x
    vmem_limit = min(vmem_cap * 3 // 4, 96 * 1024 * 1024)

    if tile_rows is None:
        tile_rows = _pick_tile_rows(N, C, itemsize, block_budget)
    grid = pl.cdiv(N, tile_rows)                         # ragged last block OK

    # --- Pallas per-row cross-entropy (single streaming pass over logits) ---
    col_iota = lax.broadcasted_iota(jnp.int32, (1, C), 1)
    tgt2d = noisy_target.reshape(N, 1)

    cost = pl.CostEstimate(
        flops=5 * N * C,
        transcendentals=N * (C + 1),
        bytes_accessed=N * C * itemsize + 8 * N + 4 * C,
    )

    row_loss = pl.pallas_call(
        _celnr_kernel,
        out_shape=jax.ShapeDtypeStruct((N, 1), jnp.float32),
        grid=(grid,),
        in_specs=[
            pl.BlockSpec((1, C), lambda i: (0, 0)),          # resident class iota
            pl.BlockSpec((tile_rows, C), lambda i: (i, 0)),  # streamed logits
            pl.BlockSpec((tile_rows, 1), lambda i: (i, 0)),  # noisy targets
        ],
        out_specs=pl.BlockSpec((tile_rows, 1), lambda i: (i, 0)),
        compiler_params=pltpu.CompilerParams(
            dimension_semantics=("parallel",),
            vmem_limit_bytes=int(vmem_limit),
        ),
        cost_estimate=cost,
    )(col_iota, logits, tgt2d)

    # Garbage rows from the ragged last block are dropped by Pallas (OOB
    # writes are masked), so every element of row_loss is a real row.
    loss = jnp.sum(row_loss[:, 0]) / jnp.float32(N)
    return loss, noisy_target


def _reference_ce(logits, noisy_target):
    """Pure-JAX reference (same noisy targets) for a correctness check."""
    logits = logits.astype(jnp.float32)
    lse = jax.nn.logsumexp(logits, axis=-1)
    picked = jnp.take_along_axis(logits, noisy_target[:, None], axis=-1)[:, 0]
    return jnp.mean(lse - picked)


if __name__ == "__main__":
    # N deliberately NOT a multiple of the tile to exercise the ragged path.
    N, C = 20, 32
    label_smoothing = 0.3

    key = jax.random.PRNGKey(0)
    k_logits, k_target, k_noise = jax.random.split(key, 3)

    logits = jax.random.normal(k_logits, (N, C), dtype=jnp.float32)
    target = jax.random.randint(k_target, (N,), 0, C, dtype=jnp.int32)

    loss, noisy_target = celnr_loss(logits, target, label_smoothing, k_noise)
    loss = jax.block_until_ready(loss)

    ref = jax.block_until_ready(_reference_ce(logits, noisy_target))
    assert np.allclose(np.asarray(loss), np.asarray(ref),
                       rtol=1e-5, atol=1e-5), (loss, ref)

    print("KERNEL_OK")
</pallas_src>

<mosaic_0001>
module attributes {stable_mosaic.version = 11 : i64} {
  func.func @_celnr_kernel(%arg0: i32, %arg1: memref<1x32xi32, #tpu.memory_space<vmem>>, %arg2: memref<16x32xf32, #tpu.memory_space<vmem>>, %arg3: memref<16x1xi32, #tpu.memory_space<vmem>>, %arg4: memref<16x1xf32, #tpu.memory_space<vmem>>) attributes {dimension_semantics = [#tpu.dimension_semantics<parallel>], iteration_bounds = array<i64: 2>, scalar_prefetch = 0 : i64, scratch_operands = 0 : i64, tpu.core_type = #tpu.core_type<tc>, window_params = [{pipeline_mode = #tpu.pipeline_mode<synchronous>, transform_indices = @transform_0, window_bounds = array<i64: 1, 32>}, {transform_indices = @transform_1, window_bounds = array<i64: 16, 32>}, {transform_indices = @transform_2, window_bounds = array<i64: 16, 1>}, {transform_indices = @transform_3, window_bounds = array<i64: 16, 1>}]} {
    %c0 = arith.constant 0 : index
    %c0_0 = arith.constant 0 : index
    %0 = vector.load %arg2[%c0, %c0_0] : memref<16x32xf32, #tpu.memory_space<vmem>>, vector<16x32xf32>
    %c0_1 = arith.constant 0 : index
    %c0_2 = arith.constant 0 : index
    %1 = vector.load %arg3[%c0_1, %c0_2] : memref<16x1xi32, #tpu.memory_space<vmem>>, vector<16x1xi32>
    %c0_3 = arith.constant 0 : index
    %c0_4 = arith.constant 0 : index
    %2 = vector.load %arg1[%c0_3, %c0_4] : memref<1x32xi32, #tpu.memory_space<vmem>>, vector<1x32xi32>
    %3 = vector.broadcast %2 : vector<1x32xi32> to vector<16x32xi32>
    %4 = vector.broadcast %1 : vector<16x1xi32> to vector<16x32xi32>
    %5 = arith.cmpi eq, %3, %4 : vector<16x32xi32>
    %6 = arith.extui %5 : vector<16x32xi1> to vector<16x32xi32>
    %7 = arith.sitofp %6 : vector<16x32xi32> to vector<16x32xf32>
    %8 = arith.mulf %7, %0 : vector<16x32xf32>
    %cst = arith.constant dense<0.000000e+00> : vector<16xf32>
    %9 = vector.multi_reduction <add>, %8, %cst [1] : vector<16x32xf32> to vector<16xf32>
    %10 = vector.shape_cast %9 : vector<16xf32> to vector<16x1xf32>
    %cst_5 = arith.constant dense<0xFF800000> : vector<16xf32>
    %11 = vector.multi_reduction <maximumf>, %0, %cst_5 [1] : vector<16x32xf32> to vector<16xf32>
    %12 = vector.shape_cast %11 : vector<16xf32> to vector<16x1xf32>
    %13 = vector.broadcast %12 : vector<16x1xf32> to vector<16x32xf32>
    %14 = arith.subf %0, %13 : vector<16x32xf32>
    %15 = math.exp %14 : vector<16x32xf32>
    %cst_6 = arith.constant dense<0.000000e+00> : vector<16xf32>
    %16 = vector.multi_reduction <add>, %15, %cst_6 [1] : vector<16x32xf32> to vector<16xf32>
    %17 = vector.shape_cast %16 : vector<16xf32> to vector<16x1xf32>
    %18 = math.log %17 : vector<16x1xf32>
    %19 = arith.addf %12, %18 : vector<16x1xf32>
    %20 = arith.subf %19, %10 : vector<16x1xf32>
    %c0_7 = arith.constant 0 : index
    %c0_8 = arith.constant 0 : index
    %21 = vector.load %arg4[%c0_7, %c0_8] : memref<16x1xf32, #tpu.memory_space<vmem>>, vector<16x1xf32>
    tpu.vector_store %arg4[%c0_7, %c0_8], %20 {strides = array<i32>} : memref<16x1xf32, #tpu.memory_space<vmem>>, vector<16x1xf32>,
    return
  }
  func.func @transform_0(%arg0: i32) -> (i32, i32) {
    %c0_i32 = arith.constant 0 : i32
    %c0_i32_0 = arith.constant 0 : i32
    %c0_i32_1 = arith.constant 0 : i32
    return %c0_i32, %c0_i32_0 : i32, i32
  }
  func.func @transform_1(%arg0: i32) -> (i32, i32) {
    %c0_i32 = arith.constant 0 : i32
    %c0_i32_0 = arith.constant 0 : i32
    return %arg0, %c0_i32 : i32, i32
  }
  func.func @transform_2(%arg0: i32) -> (i32, i32) {
    %c0_i32 = arith.constant 0 : i32
    %c0_i32_0 = arith.constant 0 : i32
    return %arg0, %c0_i32 : i32, i32
  }
  func.func @transform_3(%arg0: i32) -> (i32, i32) {
    %c0_i32 = arith.constant 0 : i32
    %c0_i32_0 = arith.constant 0 : i32
    return %arg0, %c0_i32 : i32, i32
  }
}

</mosaic_0001>

<bundles_post_ra>
// kernel: tpu_custom_call.1
= control target key start
LH: loop header
LB: loop body
LE: loop exit
PB: predicated region body
PF: predicated region fallthrough
CT: control target
= control target key end

     0   :  { %s766_s12 = smov 0   ;;  %s768_s13 = smov 0   ;;  %s861_s0 = inlined_call_operand.vmem [shape: s32[1,32], index: 0, kind: input, shape index: {}]   ;;  %s862_s1 = inlined_call_operand.vmem [shape: f32[20,32], index: 1, kind: input, shape index: {}]   ;;  %s863_s2 = inlined_call_operand.vmem [shape: s32[20,1], index: 2, kind: input, shape index: {}]   ;;  %s864_s3 = inlined_call_operand.vmem [shape: f32[20,1], index: 3, kind: output, shape index: {}]  }
   0x1   :  { %s770_s14 = smov 0  }
   0x2 LB: > { %s779_s15 = sadd.s32 4294967295, %s710_s14   ;;  %s781_s16 = sadd.s32 1, %s710_s14   ;;  %s710_s14 = sphi %s770_s14, %s868_s14   ;;  %s706_s13 = sphi %s768_s13, %s867_s13   ;;  %s702_s12 = sphi %s766_s12, %s866_s12  }
   0x3   : > { %s90_s17 = ssub.s32 %s710_s14, %s781_s16  ;;  %s93_s18 = sadd.s32 1, %s706_s13 }
   0x4   : > { %p91_p0 = scmp.eq.s32.totalorder %s90_s17, 0  ;;  %p103_p1 = scmp.ne.s32.totalorder %s706_s13, %s702_s12 }
   0x5   : > { %p104_p2 = scmp.eq.s32.totalorder %s779_s15, 1  ;;  %p527_p3 = scmp.ge.s32.totalorder %s710_s14, 1 }
   0x6   : > { %s789_s19 = scalar_select %p91_p0, %s706_s13, %s93_s18  }
   0x7   : > { %p791_p4 = por %p104_p2, %p103_p1  ;;  %p165_p5 = scmp.lt.s32.totalorder %s710_s14, 3 }
   0x9   : > { %p166_p6 = pnand %p527_p3, %p165_p5 }
   0xa   : > { %s796_s21 = sshll.u32 (!%p166_p6), %s779_s15, 1  ;;  %v744_v0 = vmov (!%p166_p6), 0   ;;  %vm257_vm0 = vcmask (!%p166_p6), 261120   ;;  %v533_v13 = vld [vmem:[%s861_s0] ss:$0 sm:$0xff] (!%p166_p6)  ;;  %v745_v16 = vmov (!%p166_p6), 0.0  }
   0xb   : > { %169 = sbr.rel (%p166_p6) target bundleno = 395 (0x18b), region = 32  ;;  %p206_p7 = scmp.lt.s32.totalorder (!%p166_p6), %s796_s21, 2  ;;  %646 = vset.pattern.permute.xlu1 (!%p166_p6), %v744_v0  ;;  %647 = vset.pattern.permute.xlu0 (!%p166_p6), %v744_v0  ;;  %vm290_vm3 = vcmask (!%p166_p6), 7168  }
   0xc   : > { %s198_s5 = sand.u32 (!%p166_p6), 1, %s702_s12  }
   0xd   : > { %s528_s6 = sshll.u32 (!%p166_p6), %s198_s5, 4 }
   0xe   : > { %s816_s7 = scalar_lea.vmem (!%p166_p6), [#allocation2], %s528_s6  }
  0x12   : > { %s207_s22 = scalar_select %p206_p7, %s796_s21, 2 }
  0x13   : > { %s301_s8 = ssub.s32 (%p791_p4), 3, %s796_s21  ;;  %s553_s9 = sshll.u32 (%p791_p4), %s779_s15, 4 }
  0x14   : > { %s530_s23 = sshll.u32 %s207_s22, 3  ;;  %p302_p8 = scmp.lt.s32.totalorder (%p791_p4), %s301_s8, 2 }
  0x15   : > { %s209_s26 = scalar_lea.vmem %s862_s1, %s530_s23  ;;  %s223_s29 = scalar_lea.vmem %s863_s2, %s530_s23 }
  0x16   : > { %v234_v1 = vld [vmem:[%s209_s26] sm:$0xff]  ;;  %v235_v2 = vld [vmem:[%s209_s26 + $0x8] sm:$0xff]  ;;  %s827_s12 = scalar_lea.vmem (%p791_p4), %s864_s3, %s553_s9  }
  0x17   : > { %v236_v3 = vld [vmem:[%s223_s29] sm:$0xff]  ;;  %v264_v4 = vsel %vm257_vm0, %v234_v1, -inf  ;;  %v237_v5 = vld [vmem:[%s223_s29 + $0x8] sm:$0xff]  ;;  %v267_v6 = vsel %vm257_vm0, %v235_v2, -inf }
  0x18   : > { %244 = vperm.xlu1 %646, %v236_v3   ;;  %265 = vmax.xlane.f32.xlu0 %v264_v4 }
  0x1c   : > { %247 = vperm.xlu1 %646, %v237_v5   ;;  %268 = vmax.xlane.f32.xlu0 %v267_v6 }
  0x97   : > { %v245_v10 = vpop.permute.xlu1 %244 }
  0x98   : > { %vm249_vm1 = vcmp.eq.s32.totalorder %v533_v13, %v245_v10 }
  0x99   : > { %v534_v17 = vsel %vm249_vm1, 1.0, %v745_v16 }
  0x9a   : > { %v255_v18 = vmul.f32 %v534_v17, %v234_v1 }
  0x9b   : > { %v248_v15 = vpop.permute.xlu1 %247 }
  0x9c   : > { %vm250_vm2 = vcmp.eq.s32.totalorder %v533_v13, %v248_v15  ;;  %v258_v22 = vsel %vm257_vm0, %v255_v18, 0.0 }
  0x9d   : > { %v535_v20 = vsel %vm250_vm2, 1.0, %v745_v16 }
  0x9e   : > { %v256_v23 = vmul.f32 %v535_v20, %v235_v2 }
  0xa0   : > { %v261_v26 = vsel %vm257_vm0, %v256_v23, 0.0 }
  0xa5   : > { %v266_v7 = vpop.xlane.xlu0 %265 }
  0xa6   : > { %v270_v8 = vsub.f32 %v234_v1, %v266_v7 }
  0xa8   : > { %v272_v9 = vmul.f32 1.442695, %v270_v8 }
  0xa9   : > { %v269_v11 = vpop.xlane.xlu0 %268 }
  0xaa   : > { %648 = vpow2.f32 %v272_v9  ;;  %v271_v12 = vsub.f32 %v235_v2, %v269_v11 }
  0xac   : > { %v274_v14 = vmul.f32 1.442695, %v271_v12 }
  0xae   : > { %650 = vpow2.f32 %v274_v14 }
  0xb4   : > { %v649_v19 = vpop.eup %648 }
  0xb5   : > { %v276_v21 = vsel %vm257_vm0, %v649_v19, 0.0 }
  0xb6   : > { %277 = vadd.xlane.f32.xlu0 %v276_v21 }
  0xb8   : > { %v651_v24 = vpop.eup %650 }
  0xb9   : > { %v279_v25 = vsel %vm257_vm0, %v651_v24, 0.0 }
  0xba   : > { %280 = vadd.xlane.f32.xlu1 %v279_v25  ;;  %259 = vadd.xlane.f32.xlu0 %v258_v22 }
  0xbe   : > { %262 = vadd.xlane.f32.xlu0 %v261_v26 }
 0x143   : > { %v278_v27 = vpop.xlane.xlu0 %277 }
 0x144   : > { %652 = vlog2.f32 %v278_v27 }
 0x147   : > { %v281_v28 = vpop.xlane.xlu1 %280  ;;  %v260_v31 = vpop.xlane.xlu0 %259 }
 0x148   : > { %654 = vlog2.f32 %v281_v28 }
 0x14b   : > { %v263_v37 = vpop.xlane.xlu0 %262 }
 0x14e   : > { %v653_v29 = vpop.eup %652 }
 0x14f   : > { %v283_v30 = vmul.f32 0.6931472, %v653_v29 }
 0x151   : > { %v286_v32 = vadd.f32 %v283_v30, %v266_v7 }
 0x152   : > { %v655_v33 = vpop.eup %654 }
 0x153   : > { %v285_v34 = vmul.f32 0.6931472, %v655_v33  ;;  %v288_v35 = vsub.f32 %v286_v32, %v260_v31  ;;  %299 = sbr.rel (!%p791_p4) target bundleno = 395 (0x18b), region = 36 }
 0x155   : > { %291 = vst.msk [vmem:[%s816_s7] sm:$0xff] %vm290_vm3, %v288_v35  ;;  %v287_v36 = vadd.f32 %v285_v34, %v269_v11 }
 0x157   : > { %v289_v38 = vsub.f32 %v287_v36, %v263_v37 }
 0x159   : > { %292 = vst.msk [vmem:[%s816_s7 + $0x8] sm:$0xff] %vm290_vm3, %v289_v38 }
 0x15a   : > { %s870_s8 = smov (!%p302_p8, %s301_s8), 2 }
 0x15b   : > { %s538_s14 = sshll.u32 %s870_s8, 7 }
 0x15c   : > { %p541_p9 = scmp.eq.s32.totalorder %s538_s14, 0 }
 0x15d   : > { %s833_s17 = sshrl.u32 (!%p541_p9), %s870_s8, 1 }
 0x15e   : > { %310 = sbr.rel (%p541_p9) target bundleno = 395 (0x18b), region = 40  ;;  %p542_p10 = scmp.le.s32.totalorder (!%p541_p9), %s833_s17, 0 }
 0x165   : > { %474 = sbr.rel (%p542_p10) target bundleno = 374 (0x176), region = 119  ;;  %s712_s15 = smov (!%p542_p10), %s827_s12  }
 0x166   : > { %s716_s18 = smov (!%p542_p10), %s816_s7   ;;  %s720_s20 = smov (!%p542_p10), 0  }
 0x167   : > { %s724_s21 = smov (!%p542_p10), 0  }
 0x16c LB: >> { %v374_v39 = vld [vmem:[%s718_s18] sm:$0xff]  ;;  %v376_v40 = vld [vmem:[%s718_s18 + $0x8] sm:$0xff]  ;;  %s378_s22 = sadd.s32 1, %s722_s20  ;;  %s368_s21 = sadd.s32 1, %s726_s21   ;;  %s726_s21 = sphi %s724_s21, %s368_s21   ;;  %s722_s20 = sphi %s720_s20, %s721_s20   ;;  %s718_s18 = sphi %s716_s18, %s383_s18   ;;  %s714_s15 = sphi %s712_s15, %s384_s15  }
 0x16d   : >> { %375 = vst [vmem:[%s714_s15] sm:$0xff] %v374_v39  ;;  %377 = vst [vmem:[%s714_s15 + $0x8] sm:$0xff] %v376_v40  ;;  %p379_p11 = scmp.ge.s32.totalorder %s378_s22, %s833_s17  ;;  %p367_p12 = scmp.ge.s32.totalorder %s368_s21, %s833_s17 }
 0x16f   : >> { %s872_s22 = smov (%p379_p11, %s378_s22), 0  ;;  %370 = sbr.rel (!%p367_p12) target bundleno = 364 (0x16c), region = 125 }
 0x170   : >> { %s543_s23 = sshll.u32 %s872_s22, 4  ;;  %s721_s20 = smov %s872_s22  }
 0x171   : >> { %s383_s18 = scalar_lea.vmem %s816_s7, %s543_s23 [#allocation2]   ;;  %s384_s15 = scalar_lea.vmem %s827_s12, %s543_s23  }
 0x176 PF: > { %s843_s24 = sand.u32 1, %s870_s8   ;;  %s554_s25 = sshll.u32 %s833_s17, 4 }
 0x177   : > { %s389_s26 = scalar_lea.vmem %s816_s7, %s554_s25 [#allocation2]   ;;  %s391_s27 = scalar_lea.vmem %s827_s12, %s554_s25  }
 0x178   : > { %p548_p13 = scmp.le.s32.totalorder %s843_s24, 0 }
 0x179   : > { %s728_s28 = smov (!%p548_p13), %s391_s27   ;;  %s732_s29 = smov (!%p548_p13), %s389_s26  }
 0x17a   : > { %488 = sbr.rel (%p548_p13) target bundleno = 395 (0x18b), region = 130  ;;  %s736_s30 = smov (!%p548_p13), 0  }
 0x17b   : > { %s740_s4 = smov (!%p548_p13), 0  }
 0x181 LB: >> { %v401_v41 = vld [vmem:[%s734_s29] sm:$0xff]  ;;  %s403_s5 = sadd.s32 1, %s738_s30  ;;  %s395_s4 = sadd.s32 1, %s742_s4   ;;  %s742_s4 = sphi %s740_s4, %s395_s4   ;;  %s738_s30 = sphi %s736_s30, %s737_s30   ;;  %s734_s29 = sphi %s732_s29, %s408_s29   ;;  %s730_s28 = sphi %s728_s28, %s409_s28  }
 0x182   : >> { %402 = vst [vmem:[%s730_s28] sm:$0xff] %v401_v41  ;;  %p404_p0 = scmp.ge.s32.totalorder %s403_s5, %s843_s24  ;;  %p394_p1 = scmp.ge.s32.totalorder %s395_s4, %s843_s24 }
 0x184   : >> { %s874_s5 = smov (%p404_p0, %s403_s5), 0  ;;  %397 = sbr.rel (!%p394_p1) target bundleno = 385 (0x181), region = 136 }
 0x185   : >> { %s549_s6 = sshll.u32 %s874_s5, 3  ;;  %s737_s30 = smov %s874_s5  }
 0x186   : >> { %s408_s29 = scalar_lea.vmem %s389_s26, %s549_s6 [#allocation2]   ;;  %s409_s28 = scalar_lea.vmem %s391_s27, %s549_s6  }
 0x18b PF: > { %p10_p2 = scmp.ge.s32.totalorder %s781_s16, 4   ;;  %s866_s12 = smov %s706_s13 }
 0x18c   : > { %s867_s13 = smov %s789_s19  ;;  %s868_s14 = smov %s781_s16 }
 0x18d   :  { %12 = sbr.rel (!%p10_p2) target bundleno = 2 (0x2), region = 147 }

</bundles_post_ra>
